<compile_context>
chip_gen: v5e
topology: v5e:2x2
jax: 0.10.0
libtpu: 0.0.40
codegen_flags: <defaults>
</compile_context>

<pallas_src>
import jax
import jax.numpy as jnp
from jax.experimental import pallas as pl
from jax.experimental.pallas import tpu as pltpu


def _decoder_kernel(x_ref, h0_ref, c0_ref, wih_ref, whh_ref, b_ref, post_ref,
                    wfc_ref, bfc_ref, pred_ref, h_out_ref, c_out_ref, hh_ref):
    """One time-chunk of LSTM decode per grid iteration.

    x_ref    : (B, Tc, D)   input block for this chunk
    h0/c0    : (B, H)       initial state (read only on chunk 0)
    wih_ref  : (D, 4H)      W_ih^T, i/f/o columns pre-scaled by 0.5
    whh_ref  : (H, 4H)      W_hh^T, i/f/o columns pre-scaled by 0.5
    b_ref    : (1, 4H)      b_ih + b_hh, i/f/o lanes pre-scaled by 0.5 (f32)
    post_ref : (2, 4H)      post-tanh per-lane affine (scale, offset) (f32)
    wfc_ref  : (H, Dp)      fc weight^T zero-padded to lane-dense Dp
    bfc_ref  : (1, Dp)
    pred_ref : (B, Tc, Dp)  per-chunk prediction block (streamed out)
    h_out/c_out : (B, H)    resident output blocks = LSTM state carried
                            across chunks (constant index_map)
    hh_ref   : (B, Tc, H)   VMEM scratch staging h_t for the batched fc head
    """
    B, Tc, D = x_ref.shape
    H = h0_ref.shape[-1]
    G = 4 * H
    Dp = wfc_ref.shape[-1]
    chunk = pl.program_id(0)

    # Seed the resident state blocks from h0/c0 on the first chunk only.
    @pl.when(chunk == 0)
    def _():
        h_out_ref[...] = h0_ref[...]
        c_out_ref[...] = c0_ref[...]

    # ---- loop-invariant loads / broadcasts, hoisted once per chunk ----
    whh = whh_ref[...]                                     # (H, 4H)
    wfc = wfc_ref[...]                                     # (H, Dp)
    post_s = jnp.broadcast_to(post_ref[0:1, :], (B, G))    # tanh->sigmoid scale
    post_o = jnp.broadcast_to(post_ref[1:2, :], (B, G))    # tanh->sigmoid offset

    # ---- batched input projection for the whole chunk: one MXU push ----
    x2 = x_ref[...].reshape(B * Tc, D)
    xp = (jnp.dot(x2.astype(wih_ref.dtype), wih_ref[...],
                  preferred_element_type=jnp.float32)
          + b_ref[...])                                    # (B*Tc, 4H), f32
    xp = xp.reshape(B, Tc, G)

    # ---- serial recurrence: h/c carried as register values, fully unrolled ----
    h = h_out_ref[...]
    c = c_out_ref[...]
    for i in range(Tc):                                    # static indices
        z = xp[:, i, :] + jnp.dot(h.astype(whh.dtype), whh,
                                  preferred_element_type=jnp.float32)
        act = jnp.tanh(z) * post_s + post_o                # one full-vreg EUP op
        i_g = act[:, 0 * H:1 * H]
        f_g = act[:, 1 * H:2 * H]
        g_g = act[:, 2 * H:3 * H]
        o_g = act[:, 3 * H:4 * H]
        c = f_g * c + i_g * g_g
        h = o_g * jnp.tanh(c)
        hh_ref[:, i, :] = h                                # stage for the fc head

    h_out_ref[...] = h                                     # once per chunk
    c_out_ref[...] = c

    # ---- batched fc head: one MXU push + one lane-dense block store ----
    hh2 = hh_ref[...].reshape(B * Tc, H)
    pred = (jnp.dot(hh2.astype(wfc.dtype), wfc,
                    preferred_element_type=jnp.float32)
            + bfc_ref[...])                                # (B*Tc, Dp)
    pred_ref[...] = pred.reshape(B, Tc, Dp)


def _pick_chunk(T):
    """Chunk length: must divide T and be a multiple of 8 (so the (B, Tc, *)
    block tiling and in-kernel reshapes stay tile-trivial) or equal T."""
    for tc in (32, 24, 16, 8):
        if T % tc == 0:
            return tc
    return T   # e.g. T == 1; large non-8-aligned T fully unrolls one chunk


@jax.jit
def decoder_forward(x, hidden, cell, params):
    """x: (B, T, D) batch_first; hidden/cell: (1, B, H).

    Returns (pred, hidden, cell).  For T == 1 (the PyTorch forward's implied
    seq_len) pred is (B, D), matching fc(output.squeeze(1)); for T > 1 it is
    (B, T, D).  The whole decode runs inside a single pallas_call.
    """
    B, T, D = x.shape
    H = hidden.shape[-1]
    G = 4 * H
    Dp = params["w_fc"].shape[-1]
    Tc = _pick_chunk(T)

    x = x.astype(jnp.float32)
    h0 = hidden.reshape(B, H).astype(jnp.float32)
    c0 = cell.reshape(B, H).astype(jnp.float32)

    const = lambda shape: pl.BlockSpec(shape, lambda t, _s=shape: (0,) * len(_s))

    pred_p, h_new, c_new = pl.pallas_call(
        _decoder_kernel,
        grid=(T // Tc,),
        in_specs=[
            pl.BlockSpec((B, Tc, D), lambda t: (0, t, 0)),   # x chunk
            const((B, H)),                                   # h0
            const((B, H)),                                   # c0
            const((D, G)),                                   # W_ih^T (prescaled)
            const((H, G)),                                   # W_hh^T (prescaled)
            const((1, G)),                                   # fused bias
            const((2, G)),                                   # tanh->sigmoid fixup
            const((H, Dp)),                                  # fc weight (padded)
            const((1, Dp)),                                  # fc bias (padded)
        ],
        out_specs=(
            pl.BlockSpec((B, Tc, Dp), lambda t: (0, t, 0)),  # pred chunk
            const((B, H)),                                   # final h (resident)
            const((B, H)),                                   # final c (resident)
        ),
        out_shape=(
            jax.ShapeDtypeStruct((B, T, Dp), jnp.float32),
            jax.ShapeDtypeStruct((B, H), jnp.float32),
            jax.ShapeDtypeStruct((B, H), jnp.float32),
        ),
        scratch_shapes=[pltpu.VMEM((B, Tc, H), jnp.float32)],
        compiler_params=pltpu.CompilerParams(
            dimension_semantics=("arbitrary",)),             # serial recurrence
    )(x, h0, c0, params["w_ih"], params["w_hh"], params["b"], params["post"],
      params["w_fc"], params["b_fc"])

    pred = pred_p[:, :, :D]                                  # drop lane padding
    if T == 1:
        pred = pred[:, 0, :]                                 # (B, D)
    return pred, h_new.reshape(1, B, H), c_new.reshape(1, B, H)


def init_params(key, output_dim, hidden_dim):
    """PyTorch-style raw params, U(-1/sqrt(H), 1/sqrt(H))."""
    ks = jax.random.split(key, 6)
    k = 1.0 / jnp.sqrt(hidden_dim)
    u = lambda kk, shape: jax.random.uniform(kk, shape, jnp.float32, -k, k)
    return {
        "w_ih": u(ks[0], (4 * hidden_dim, output_dim)),
        "w_hh": u(ks[1], (4 * hidden_dim, hidden_dim)),
        "b_ih": u(ks[2], (4 * hidden_dim,)),
        "b_hh": u(ks[3], (4 * hidden_dim,)),
        "w_fc": u(ks[4], (output_dim, hidden_dim)),
        "b_fc": u(ks[5], (output_dim,)),
    }


def prepare_params(raw, weight_dtype=jnp.bfloat16):
    """One-time param prep: transpose, fuse biases, fold the sigmoid /2 into
    the i/f/o columns, zero-pad the fc head to a lane-dense (128-multiple)
    output width, and (optionally) store weights in bf16 (MXU-native; halves
    weight DMA/VMEM bytes — relevant before scaling H on v7x's 64 MiB VMEM)."""
    H4, D = raw["w_ih"].shape
    H = H4 // 4

    # sigmoid(z) = 0.5*(tanh(z/2)+1): fold z/2 into i/f/o columns; g stays tanh
    col = jnp.arange(4 * H)
    is_g = (col >= 2 * H) & (col < 3 * H)
    pre = jnp.where(is_g, 1.0, 0.5)

    w_ih_t = (raw["w_ih"].T * pre[None, :])                  # (D, 4H)
    w_hh_t = (raw["w_hh"].T * pre[None, :])                  # (H, 4H)
    b = ((raw["b_ih"] + raw["b_hh"]) * pre).reshape(1, 4 * H)
    post = jnp.stack([jnp.where(is_g, 1.0, 0.5),             # scale after tanh
                      jnp.where(is_g, 0.0, 0.5)])            # offset after tanh

    Dp = ((D + 127) // 128) * 128                            # lane-dense fc width
    w_fc_p = jnp.zeros((H, Dp), jnp.float32).at[:, :D].set(raw["w_fc"].T)
    b_fc_p = jnp.zeros((1, Dp), jnp.float32).at[:, :D].set(raw["b_fc"][None, :])

    return {
        "w_ih": w_ih_t.astype(weight_dtype),
        "w_hh": w_hh_t.astype(weight_dtype),
        "b": b.astype(jnp.float32),
        "post": post.astype(jnp.float32),
        "w_fc": w_fc_p.astype(weight_dtype),
        "b_fc": b_fc_p.astype(jnp.float32),
    }


def _reference_step(x2d, h, c, raw):
    H = h.shape[-1]
    gates = (x2d @ raw["w_ih"].T + raw["b_ih"] + h @ raw["w_hh"].T + raw["b_hh"])
    i_g = jax.nn.sigmoid(gates[:, 0 * H:1 * H])
    f_g = jax.nn.sigmoid(gates[:, 1 * H:2 * H])
    g_g = jnp.tanh(gates[:, 2 * H:3 * H])
    o_g = jax.nn.sigmoid(gates[:, 3 * H:4 * H])
    c_new = f_g * c + i_g * g_g
    h_new = o_g * jnp.tanh(c_new)
    pred = h_new @ raw["w_fc"].T + raw["b_fc"]
    return pred, h_new, c_new


def _reference(x, hidden, cell, raw):
    """Pure-JAX reference (PyTorch LSTM step semantics, looped over T)."""
    B, T, D = x.shape
    H = hidden.shape[-1]
    h = hidden.reshape(B, H)
    c = cell.reshape(B, H)
    preds = []
    for t in range(T):
        p, h, c = _reference_step(x[:, t, :], h, c, raw)
        preds.append(p)
    pred = preds[0] if T == 1 else jnp.stack(preds, axis=1)
    return pred, h.reshape(1, B, H), c.reshape(1, B, H)


if __name__ == "__main__":
    output_dim = 8
    hidden_dim = 32
    batch = 8      # full sublane occupancy for the elementwise gate math

    key = jax.random.PRNGKey(0)
    kp, kx, kh, kc, kx2, kx3 = jax.random.split(key, 6)
    raw = init_params(kp, output_dim, hidden_dim)
    params_f32 = prepare_params(raw, weight_dtype=jnp.float32)   # exact path
    params_bf16 = prepare_params(raw, weight_dtype=jnp.bfloat16)  # MXU-native

    hidden = jax.random.normal(kh, (1, batch, hidden_dim), jnp.float32)
    cell = jax.random.normal(kc, (1, batch, hidden_dim), jnp.float32)

    # --- single decoder step: exact module forward semantics (seq_len == 1) ---
    x = jax.random.normal(kx, (batch, 1, output_dim), jnp.float32)
    pred, h_new, c_new = decoder_forward(x, hidden, cell, params_f32)
    jax.block_until_ready((pred, h_new, c_new))
    pred_r, h_r, c_r = _reference(x, hidden, cell, raw)
    assert jnp.allclose(pred, pred_r, atol=5e-4), float(jnp.max(jnp.abs(pred - pred_r)))
    assert jnp.allclose(h_new, h_r, atol=5e-4)
    assert jnp.allclose(c_new, c_r, atol=5e-4)

    # --- multi-step decode: whole chunk inside one grid step (Tc == T == 8) ---
    T = 8
    xs = jax.random.normal(kx2, (batch, T, output_dim), jnp.float32)
    pred_s, h_s, c_s = decoder_forward(xs, hidden, cell, params_f32)
    jax.block_until_ready((pred_s, h_s, c_s))
    pred_sr, h_sr, c_sr = _reference(xs, hidden, cell, raw)
    assert jnp.allclose(pred_s, pred_sr, atol=5e-4), float(jnp.max(jnp.abs(pred_s - pred_sr)))
    assert jnp.allclose(h_s, h_sr, atol=5e-4)
    assert jnp.allclose(c_s, c_sr, atol=5e-4)

    # --- long decode: multiple chunks, state carried across grid steps ---
    T2 = 64                     # Tc = 32 -> grid of 2 chunks
    xl = jax.random.normal(kx3, (batch, T2, output_dim), jnp.float32)
    pred_l, h_l, c_l = decoder_forward(xl, hidden, cell, params_f32)
    jax.block_until_ready((pred_l, h_l, c_l))
    pred_lr, h_lr, c_lr = _reference(xl, hidden, cell, raw)
    assert jnp.allclose(pred_l, pred_lr, atol=5e-4), float(jnp.max(jnp.abs(pred_l - pred_lr)))
    assert jnp.allclose(h_l, h_lr, atol=5e-4)
    assert jnp.allclose(c_l, c_lr, atol=5e-4)

    # --- bf16 weight path (f32 accumulate / f32 gate math): looser tolerance ---
    pred_b, h_b, c_b = decoder_forward(xs, hidden, cell, params_bf16)
    jax.block_until_ready((pred_b, h_b, c_b))
    assert jnp.allclose(pred_b, pred_sr, atol=5e-2), float(jnp.max(jnp.abs(pred_b - pred_sr)))
    assert jnp.allclose(h_b, h_sr, atol=5e-2)
    assert jnp.allclose(c_b, c_sr, atol=5e-2)

    print("KERNEL_OK")
</pallas_src>

<mosaic_0001>
module attributes {stable_mosaic.version = 11 : i64} {
  func.func @_decoder_kernel(%arg0: i32, %arg1: memref<8x1x8xf32, #tpu.memory_space<vmem>>, %arg2: memref<8x32xf32, #tpu.memory_space<vmem>>, %arg3: memref<8x32xf32, #tpu.memory_space<vmem>>, %arg4: memref<8x128xf32, #tpu.memory_space<vmem>>, %arg5: memref<32x128xf32, #tpu.memory_space<vmem>>, %arg6: memref<1x128xf32, #tpu.memory_space<vmem>>, %arg7: memref<2x128xf32, #tpu.memory_space<vmem>>, %arg8: memref<32x128xf32, #tpu.memory_space<vmem>>, %arg9: memref<1x128xf32, #tpu.memory_space<vmem>>, %arg10: memref<8x1x128xf32, #tpu.memory_space<vmem>>, %arg11: memref<8x32xf32, #tpu.memory_space<vmem>>, %arg12: memref<8x32xf32, #tpu.memory_space<vmem>>, %arg13: memref<8x1x32xf32, #tpu.memory_space<vmem>>) attributes {dimension_semantics = [#tpu.dimension_semantics<arbitrary>], iteration_bounds = array<i64: 1>, scalar_prefetch = 0 : i64, scratch_operands = 1 : i64, tpu.core_type = #tpu.core_type<tc>, window_params = [{transform_indices = @transform_0, window_bounds = array<i64: 8, 1, 8>}, {pipeline_mode = #tpu.pipeline_mode<synchronous>, transform_indices = @transform_1, window_bounds = array<i64: 8, 32>}, {pipeline_mode = #tpu.pipeline_mode<synchronous>, transform_indices = @transform_2, window_bounds = array<i64: 8, 32>}, {pipeline_mode = #tpu.pipeline_mode<synchronous>, transform_indices = @transform_3, window_bounds = array<i64: 8, 128>}, {pipeline_mode = #tpu.pipeline_mode<synchronous>, transform_indices = @transform_4, window_bounds = array<i64: 32, 128>}, {pipeline_mode = #tpu.pipeline_mode<synchronous>, transform_indices = @transform_5, window_bounds = array<i64: 1, 128>}, {pipeline_mode = #tpu.pipeline_mode<synchronous>, transform_indices = @transform_6, window_bounds = array<i64: 2, 128>}, {pipeline_mode = #tpu.pipeline_mode<synchronous>, transform_indices = @transform_7, window_bounds = array<i64: 32, 128>}, {pipeline_mode = #tpu.pipeline_mode<synchronous>, transform_indices = @transform_8, window_bounds = array<i64: 1, 128>}, {transform_indices = @transform_9, window_bounds = array<i64: 8, 1, 128>}, {pipeline_mode = #tpu.pipeline_mode<synchronous>, transform_indices = @transform_10, window_bounds = array<i64: 8, 32>}, {pipeline_mode = #tpu.pipeline_mode<synchronous>, transform_indices = @transform_11, window_bounds = array<i64: 8, 32>}]} {
    %c0_i32 = arith.constant 0 : i32
    %0 = arith.cmpi eq, %arg0, %c0_i32 : i32
    %1 = arith.extui %0 : i1 to i32
    %c0_i32_0 = arith.constant 0 : i32
    %2 = arith.cmpi ne, %1, %c0_i32_0 : i32
    scf.if %2 {
      %c0_35 = arith.constant 0 : index
      %c0_36 = arith.constant 0 : index
      %49 = vector.load %arg2[%c0_35, %c0_36] : memref<8x32xf32, #tpu.memory_space<vmem>>, vector<8x32xf32>
      %c0_37 = arith.constant 0 : index
      %c0_38 = arith.constant 0 : index
      %50 = vector.load %arg11[%c0_37, %c0_38] : memref<8x32xf32, #tpu.memory_space<vmem>>, vector<8x32xf32>
      tpu.vector_store %arg11[%c0_37, %c0_38], %49 {strides = array<i32>} : memref<8x32xf32, #tpu.memory_space<vmem>>, vector<8x32xf32>,
      %c0_39 = arith.constant 0 : index
      %c0_40 = arith.constant 0 : index
      %51 = vector.load %arg3[%c0_39, %c0_40] : memref<8x32xf32, #tpu.memory_space<vmem>>, vector<8x32xf32>
      %c0_41 = arith.constant 0 : index
      %c0_42 = arith.constant 0 : index
      %52 = vector.load %arg12[%c0_41, %c0_42] : memref<8x32xf32, #tpu.memory_space<vmem>>, vector<8x32xf32>
      tpu.vector_store %arg12[%c0_41, %c0_42], %51 {strides = array<i32>} : memref<8x32xf32, #tpu.memory_space<vmem>>, vector<8x32xf32>,
    } else {
    }
    %c0 = arith.constant 0 : index
    %c0_1 = arith.constant 0 : index
    %3 = vector.load %arg5[%c0, %c0_1] : memref<32x128xf32, #tpu.memory_space<vmem>>, vector<32x128xf32>
    %c0_2 = arith.constant 0 : index
    %c0_3 = arith.constant 0 : index
    %4 = vector.load %arg8[%c0_2, %c0_3] : memref<32x128xf32, #tpu.memory_space<vmem>>, vector<32x128xf32>
    %c0_4 = arith.constant 0 : index
    %c0_5 = arith.constant 0 : index
    %5 = vector.load %arg7[%c0_4, %c0_5] : memref<2x128xf32, #tpu.memory_space<vmem>>, vector<1x128xf32>
    %6 = vector.shape_cast %5 : vector<1x128xf32> to vector<1x128xf32>
    %7 = vector.broadcast %6 : vector<1x128xf32> to vector<8x128xf32>
    %c1 = arith.constant 1 : index
    %c0_6 = arith.constant 0 : index
    %8 = vector.load %arg7[%c1, %c0_6] : memref<2x128xf32, #tpu.memory_space<vmem>>, vector<1x128xf32>
    %9 = vector.shape_cast %8 : vector<1x128xf32> to vector<1x128xf32>
    %10 = vector.broadcast %9 : vector<1x128xf32> to vector<8x128xf32>
    %c0_7 = arith.constant 0 : index
    %c0_8 = arith.constant 0 : index
    %c0_9 = arith.constant 0 : index
    %11 = vector.load %arg1[%c0_7, %c0_8, %c0_9] : memref<8x1x8xf32, #tpu.memory_space<vmem>>, vector<8x1x8xf32>
    %12 = vector.shape_cast %11 : vector<8x1x8xf32> to vector<8x8xf32>
    %c0_10 = arith.constant 0 : index
    %c0_11 = arith.constant 0 : index
    %13 = vector.load %arg4[%c0_10, %c0_11] : memref<8x128xf32, #tpu.memory_space<vmem>>, vector<8x128xf32>
    %cst = arith.constant dense<0.000000e+00> : vector<8x128xf32>
    %14 = tpu.matmul %12, %13, %cst {dimension_numbers = #tpu.dot_dimension_numbers<[1], [0], [0], [1], [0, 0, 1, 1], [], []>} : vector<8x8xf32>, vector<8x128xf32>, vector<8x128xf32> -> vector<8x128xf32>
    %c0_12 = arith.constant 0 : index
    %c0_13 = arith.constant 0 : index
    %15 = vector.load %arg6[%c0_12, %c0_13] : memref<1x128xf32, #tpu.memory_space<vmem>>, vector<1x128xf32>
    %16 = vector.broadcast %15 : vector<1x128xf32> to vector<8x128xf32>
    %17 = arith.addf %14, %16 : vector<8x128xf32>
    %18 = vector.shape_cast %17 : vector<8x128xf32> to vector<8x1x128xf32>
    %c0_14 = arith.constant 0 : index
    %c0_15 = arith.constant 0 : index
    %19 = vector.load %arg11[%c0_14, %c0_15] : memref<8x32xf32, #tpu.memory_space<vmem>>, vector<8x32xf32>
    %c0_16 = arith.constant 0 : index
    %c0_17 = arith.constant 0 : index
    %20 = vector.load %arg12[%c0_16, %c0_17] : memref<8x32xf32, #tpu.memory_space<vmem>>, vector<8x32xf32>
    %21 = vector.shape_cast %18 : vector<8x1x128xf32> to vector<8x128xf32>
    %cst_18 = arith.constant dense<0.000000e+00> : vector<8x128xf32>
    %22 = tpu.matmul %19, %3, %cst_18 {dimension_numbers = #tpu.dot_dimension_numbers<[1], [0], [0], [1], [0, 0, 1, 1], [], []>} : vector<8x32xf32>, vector<32x128xf32>, vector<8x128xf32> -> vector<8x128xf32>
    %23 = arith.addf %21, %22 : vector<8x128xf32>
    %24 = math.tanh %23 : vector<8x128xf32>
    %25 = arith.mulf %24, %7 : vector<8x128xf32>
    %26 = arith.addf %25, %10 : vector<8x128xf32>
    %27 = vector.extract_strided_slice %26 {offsets = [0, 0], sizes = [8, 32], strides = [1, 1]} : vector<8x128xf32> to vector<8x32xf32>
    %28 = vector.extract_strided_slice %26 {offsets = [0, 32], sizes = [8, 32], strides = [1, 1]} : vector<8x128xf32> to vector<8x32xf32>
    %29 = vector.extract_strided_slice %26 {offsets = [0, 64], sizes = [8, 32], strides = [1, 1]} : vector<8x128xf32> to vector<8x32xf32>
    %30 = vector.extract_strided_slice %26 {offsets = [0, 96], sizes = [8, 32], strides = [1, 1]} : vector<8x128xf32> to vector<8x32xf32>
    %31 = arith.mulf %28, %20 : vector<8x32xf32>
    %32 = arith.mulf %27, %29 : vector<8x32xf32>
    %33 = arith.addf %31, %32 : vector<8x32xf32>
    %34 = math.tanh %33 : vector<8x32xf32>
    %35 = arith.mulf %30, %34 : vector<8x32xf32>
    %c0_19 = arith.constant 0 : index
    %c0_20 = arith.constant 0 : index
    %c0_21 = arith.constant 0 : index
    %36 = vector.load %arg13[%c0_19, %c0_20, %c0_21] : memref<8x1x32xf32, #tpu.memory_space<vmem>>, vector<8x1x32xf32>
    %37 = vector.shape_cast %36 : vector<8x1x32xf32> to vector<8x32xf32>
    %38 = vector.shape_cast %35 : vector<8x32xf32> to vector<8x1x32xf32>
    tpu.vector_store %arg13[%c0_19, %c0_20, %c0_21], %38 {strides = array<i32>} : memref<8x1x32xf32, #tpu.memory_space<vmem>>, vector<8x1x32xf32>,
    %c0_22 = arith.constant 0 : index
    %c0_23 = arith.constant 0 : index
    %39 = vector.load %arg11[%c0_22, %c0_23] : memref<8x32xf32, #tpu.memory_space<vmem>>, vector<8x32xf32>
    tpu.vector_store %arg11[%c0_22, %c0_23], %35 {strides = array<i32>} : memref<8x32xf32, #tpu.memory_space<vmem>>, vector<8x32xf32>,
    %c0_24 = arith.constant 0 : index
    %c0_25 = arith.constant 0 : index
    %40 = vector.load %arg12[%c0_24, %c0_25] : memref<8x32xf32, #tpu.memory_space<vmem>>, vector<8x32xf32>
    tpu.vector_store %arg12[%c0_24, %c0_25], %33 {strides = array<i32>} : memref<8x32xf32, #tpu.memory_space<vmem>>, vector<8x32xf32>,
    %c0_26 = arith.constant 0 : index
    %c0_27 = arith.constant 0 : index
    %c0_28 = arith.constant 0 : index
    %41 = vector.load %arg13[%c0_26, %c0_27, %c0_28] : memref<8x1x32xf32, #tpu.memory_space<vmem>>, vector<8x1x32xf32>
    %42 = vector.shape_cast %41 : vector<8x1x32xf32> to vector<8x32xf32>
    %cst_29 = arith.constant dense<0.000000e+00> : vector<8x128xf32>
    %43 = tpu.matmul %42, %4, %cst_29 {dimension_numbers = #tpu.dot_dimension_numbers<[1], [0], [0], [1], [0, 0, 1, 1], [], []>} : vector<8x32xf32>, vector<32x128xf32>, vector<8x128xf32> -> vector<8x128xf32>
    %c0_30 = arith.constant 0 : index
    %c0_31 = arith.constant 0 : index
    %44 = vector.load %arg9[%c0_30, %c0_31] : memref<1x128xf32, #tpu.memory_space<vmem>>, vector<1x128xf32>
    %45 = vector.broadcast %44 : vector<1x128xf32> to vector<8x128xf32>
    %46 = arith.addf %43, %45 : vector<8x128xf32>
    %47 = vector.shape_cast %46 : vector<8x128xf32> to vector<8x1x128xf32>
    %c0_32 = arith.constant 0 : index
    %c0_33 = arith.constant 0 : index
    %c0_34 = arith.constant 0 : index
    %48 = vector.load %arg10[%c0_32, %c0_33, %c0_34] : memref<8x1x128xf32, #tpu.memory_space<vmem>>, vector<8x1x128xf32>
    tpu.vector_store %arg10[%c0_32, %c0_33, %c0_34], %47 {strides = array<i32>} : memref<8x1x128xf32, #tpu.memory_space<vmem>>, vector<8x1x128xf32>,
    return
  }
  func.func @transform_0(%arg0: i32) -> (i32, i32, i32) {
    %c0_i32 = arith.constant 0 : i32
    %c0_i32_0 = arith.constant 0 : i32
    %c0_i32_1 = arith.constant 0 : i32
    return %c0_i32, %arg0, %c0_i32_0 : i32, i32, i32
  }
  func.func @transform_1(%arg0: i32) -> (i32, i32) {
    %c0_i32 = arith.constant 0 : i32
    %c0_i32_0 = arith.constant 0 : i32
    %c0_i32_1 = arith.constant 0 : i32
    return %c0_i32, %c0_i32_0 : i32, i32
  }
  func.func @transform_2(%arg0: i32) -> (i32, i32) {
    %c0_i32 = arith.constant 0 : i32
    %c0_i32_0 = arith.constant 0 : i32
    %c0_i32_1 = arith.constant 0 : i32
    return %c0_i32, %c0_i32_0 : i32, i32
  }
  func.func @transform_3(%arg0: i32) -> (i32, i32) {
    %c0_i32 = arith.constant 0 : i32
    %c0_i32_0 = arith.constant 0 : i32
    %c0_i32_1 = arith.constant 0 : i32
    return %c0_i32, %c0_i32_0 : i32, i32
  }
  func.func @transform_4(%arg0: i32) -> (i32, i32) {
    %c0_i32 = arith.constant 0 : i32
    %c0_i32_0 = arith.constant 0 : i32
    %c0_i32_1 = arith.constant 0 : i32
    return %c0_i32, %c0_i32_0 : i32, i32
  }
  func.func @transform_5(%arg0: i32) -> (i32, i32) {
    %c0_i32 = arith.constant 0 : i32
    %c0_i32_0 = arith.constant 0 : i32
    %c0_i32_1 = arith.constant 0 : i32
    return %c0_i32, %c0_i32_0 : i32, i32
  }
  func.func @transform_6(%arg0: i32) -> (i32, i32) {
    %c0_i32 = arith.constant 0 : i32
    %c0_i32_0 = arith.constant 0 : i32
    %c0_i32_1 = arith.constant 0 : i32
    return %c0_i32, %c0_i32_0 : i32, i32
  }
  func.func @transform_7(%arg0: i32) -> (i32, i32) {
    %c0_i32 = arith.constant 0 : i32
    %c0_i32_0 = arith.constant 0 : i32
    %c0_i32_1 = arith.constant 0 : i32
    return %c0_i32, %c0_i32_0 : i32, i32
  }
  func.func @transform_8(%arg0: i32) -> (i32, i32) {
    %c0_i32 = arith.constant 0 : i32
    %c0_i32_0 = arith.constant 0 : i32
    %c0_i32_1 = arith.constant 0 : i32
    return %c0_i32, %c0_i32_0 : i32, i32
  }
  func.func @transform_9(%arg0: i32) -> (i32, i32, i32) {
    %c0_i32 = arith.constant 0 : i32
    %c0_i32_0 = arith.constant 0 : i32
    %c0_i32_1 = arith.constant 0 : i32
    return %c0_i32, %arg0, %c0_i32_0 : i32, i32, i32
  }
  func.func @transform_10(%arg0: i32) -> (i32, i32) {
    %c0_i32 = arith.constant 0 : i32
    %c0_i32_0 = arith.constant 0 : i32
    %c0_i32_1 = arith.constant 0 : i32
    return %c0_i32, %c0_i32_0 : i32, i32
  }
  func.func @transform_11(%arg0: i32) -> (i32, i32) {
    %c0_i32 = arith.constant 0 : i32
    %c0_i32_0 = arith.constant 0 : i32
    %c0_i32_1 = arith.constant 0 : i32
    return %c0_i32, %c0_i32_0 : i32, i32
  }
}

</mosaic_0001>

<bundles_post_ra>
// kernel: decoder_forward.1
= control target key start
LH: loop header
LB: loop body
LE: loop exit
PB: predicated region body
PF: predicated region fallthrough
CT: control target
= control target key end

     0   :  { %17 = vsyncpa [#allocation4], 0  ;;  %s886_s0 = inlined_call_operand.hbm [shape: f32[8,1,8], index: 0, kind: input, shape index: {}]   ;;  %s887_s1 = inlined_call_operand.hbm [shape: f32[8,32], index: 1, kind: input, shape index: {}]   ;;  %s888_s2 = inlined_call_operand.hbm [shape: f32[8,32], index: 2, kind: input, shape index: {}]   ;;  %s889_s3 = inlined_call_operand.vmem [shape: f32[8,128], index: 3, kind: input, shape index: {}]   ;;  %s890_s4 = inlined_call_operand.hbm [shape: f32[32,128], index: 4, kind: input, shape index: {}]   ;;  %s891_s5 = inlined_call_operand.vmem [shape: f32[1,128], index: 5, kind: input, shape index: {}]   ;;  %s892_s6 = inlined_call_operand.hbm [shape: f32[2,128], index: 6, kind: input, shape index: {}]   ;;  %s893_s7 = inlined_call_operand.hbm [shape: f32[32,128], index: 7, kind: input, shape index: {}]   ;;  %s894_s8 = inlined_call_operand.hbm [shape: f32[1,128], index: 8, kind: input, shape index: {}]   ;;  %s895_s9 = inlined_call_operand.hbm [shape: f32[8,1,128], index: 9, kind: output, shape index: {0}]   ;;  %s896_s10 = inlined_call_operand.hbm [shape: f32[8,32], index: 10, kind: output, shape index: {1}]   ;;  %s897_s11 = inlined_call_operand.hbm [shape: f32[8,32], index: 11, kind: output, shape index: {2}]  }
   0x1   :  { %18 = vsyncpa [#allocation7], 0 }
   0x2   :  { %19 = vsyncpa [#allocation10], 0 }
   0x3   :  { %20 = vsyncpa [#allocation13], 0 }
   0x4   :  { %21 = vsyncpa [#allocation5], 0  ;;  %s41_s19 = sshll.u32 %s887_s1, 4  ;;  %s42_s19 = int_to_ptr.hbm [resolvable:$true] %s41_s19 }
   0x5   :  { %22 = vsyncpa [#allocation17], 0  ;;  %s742_s20 = smov [#allocation6]   ;;  %s64_s24 = sshll.u32 %s890_s4, 4  ;;  %s65_s24 = int_to_ptr.hbm [resolvable:$true] %s64_s24 }
   0x6   :  { %s43_s21 = sshll.u32 %s742_s20, 4  ;;  %s743_s25 = smov [#allocation9]   ;;  %s44_s21 = int_to_ptr.vmem [resolvable:$true] %s43_s21 }
   0x7   :  { %46 = dma.hbm_to_vmem [thread:$0]  %s42_s19, 128, %s44_s21, [#allocation7]  }
   0x8   :  { %s66_s26 = sshll.u32 %s743_s25, 4  ;;  %s744_s27 = smov 128   ;;  %s67_s26 = int_to_ptr.vmem [resolvable:$true] %s66_s26 }
   0x9   :  { %s745_s28 = smov 8   ;;  %s90_s1 = sshll.u32 %s893_s7, 4  ;;  %s91_s1 = int_to_ptr.hbm [resolvable:$true] %s90_s1 }
   0xa   :  { %72 = dma.hbm_to_vmem [thread:$0]  %s65_s24, 512, %s67_s26, [#allocation10], %s744_s27, %s744_s27, %s745_s28  }
   0xb   :  { %s746_s12 = smov [#allocation12]   ;;  %s27_s4 = sshll.u32 %s886_s0, 4  ;;  %s28_s4 = int_to_ptr.hbm [resolvable:$true] %s27_s4 }
   0xc   :  { %s92_s13 = sshll.u32 %s746_s12, 4  ;;  %s747_s16 = smov [#allocation3]   ;;  %s93_s13 = int_to_ptr.vmem [resolvable:$true] %s92_s13 }
   0xd   :  { %98 = dma.hbm_to_vmem [thread:$0]  %s91_s1, 512, %s93_s13, [#allocation13], %s744_s27, %s744_s27, %s745_s28  }
   0xe   :  { %s29_s17 = sshll.u32 %s747_s16, 4  ;;  %s748_s18 = smov 16   ;;  %s30_s17 = int_to_ptr.vmem [resolvable:$true] %s29_s17 }
   0xf   :  { %s749_s19 = smov 1   ;;  %s52_s21 = sshll.u32 %s888_s2, 4  ;;  %s53_s21 = int_to_ptr.hbm [resolvable:$true] %s52_s21 }
  0x10   :  { %35 = dma.hbm_to_vmem [thread:$0]  %s28_s4, 128, %s30_s17, [#allocation4], %s748_s18, %s748_s18, %s749_s19  }
  0x11   :  { %s750_s22 = smov [#allocation8]   ;;  %s80_s25 = sshll.u32 %s892_s6, 4  ;;  %s81_s25 = int_to_ptr.hbm [resolvable:$true] %s80_s25 }
  0x12   :  { %s54_s23 = sshll.u32 %s750_s22, 4  ;;  %s751_s26 = smov [#allocation11]   ;;  %s55_s23 = int_to_ptr.vmem [resolvable:$true] %s54_s23 }
  0x13   :  { %57 = dma.hbm_to_vmem [thread:$0]  %s53_s21, 128, %s55_s23, [#allocation7]  }
  0x14   :  { %s82_s27 = sshll.u32 %s751_s26, 4  ;;  %s104_s30 = sshll.u32 %s894_s8, 4  ;;  %s83_s27 = int_to_ptr.vmem [resolvable:$true] %s82_s27  ;;  %s105_s30 = int_to_ptr.hbm [resolvable:$true] %s104_s30 }
  0x15   :  { %85 = dma.hbm_to_vmem [thread:$0]  %s81_s25, 32, %s83_s27, [#allocation10]  }
  0x16   :  { %s752_s2 = smov [#allocation14]  }
  0x17   :  { %s106_s1 = sshll.u32 %s752_s2, 4  ;;  %s107_s1 = int_to_ptr.vmem [resolvable:$true] %s106_s1 }
  0x18   :  { %109 = dma.hbm_to_vmem [thread:$0]  %s105_s30, 16, %s107_s1, [#allocation13]  }
  0x19   :  { %730 = dma.done.wait [#allocation4], 128  }
  0x1a   :  { %731 = vsyncadd [#allocation4], 4294967168 }
  0x1b   :  { %732 = dma.done.wait [#allocation7], 256  }
  0x1c   :  { %733 = vsyncadd [#allocation7], 4294967040 }
  0x1d   :  { %734 = dma.done.wait [#allocation10], 544  }
  0x1e   :  { %735 = vsyncadd [#allocation10], 4294966752 }
  0x1f   :  { %736 = dma.done.wait [#allocation13], 528  }
  0x20   :  { %737 = vsyncadd [#allocation13], 4294966768  ;;  %v150_v0 = vld [vmem:[#allocation9 + $0x18] sm:$0xff]  ;;  %v149_v1 = vld [vmem:[#allocation9 + $0x10] sm:$0xff]  ;;  %vm143_vm0 = vcmask 261120   ;;  %vm196_vm1 = vcmask 64512  }
  0x21   :  { %v167_v2 = vld [vmem:[%s889_s3] sm:$0xff]  ;;  %237 = vmatpush.msra.mxu1 %v150_v0  ;;  %v159_v3 = vld [vmem:[#allocation3] sm:$0x1]  ;;  %v160_v5 = vld [vmem:[#allocation3 + $0x1] sm:$0x1]  ;;  %s753_s13 = smov 64  }
  0x22   :  { %214 = vmatpush.msra.mxu0 %v167_v2  ;;  %v148_v4 = vld [vmem:[#allocation9 + $0x8] sm:$0xff]  ;;  %180 = vst [vmem:[#allocation1] ss:$9 sm:$0xff] %v159_v3  ;;  %v147_v9 = vld [vmem:[#allocation9] sm:$0xff]  ;;  %v142_v13 = vld [vmem:[#allocation6] sm:$0xff]  ;;  %s754_s14 = smov 32  }
  0x23   :  { %238 = vmatpush.msra.mxu1 %v149_v1  ;;  %v161_v6 = vld [vmem:[#allocation3 + $0x2] sm:$0x1]  ;;  %v162_v7 = vld [vmem:[#allocation3 + $0x3] sm:$0x1]  ;;  %v163_v8 = vld [vmem:[#allocation3 + $0x4] sm:$0x1] }
  0x24   :  { %v164_v10 = vld [vmem:[#allocation3 + $0x5] sm:$0x1]  ;;  %182 = vst [vmem:[#allocation1 + $0x1] ss:$9 sm:$0xff] %v160_v5  ;;  %v165_v11 = vld [vmem:[#allocation3 + $0x6] sm:$0x1] }
  0x25   :  { %239 = vmatpush.msra.mxu1 %v148_v4  ;;  %184 = vst [vmem:[#allocation1 + $0x2] ss:$9 sm:$0xff] %v161_v6  ;;  %v166_v12 = vld [vmem:[#allocation3 + $0x7] sm:$0x1]  ;;  %v145_v14 = vld [vmem:[#allocation8] sm:$0xff]  ;;  %vm310_vm2 = vcmask 253952  }
  0x26   :  { %186 = vst [vmem:[#allocation1 + $0x3] ss:$9 sm:$0xff] %v162_v7  ;;  %v482_v17 = vld [vmem:[%s891_s5] ss:$0 sm:$0xff]  ;;  %v483_v22 = vld [vmem:[#allocation11] ss:$0 sm:$0xff] }
  0x27   :  { %240 = vmatpush.msra.mxu1 %v147_v9  ;;  %188 = vst [vmem:[#allocation1 + $0x4] ss:$9 sm:$0xff] %v163_v8  ;;  %v484_v23 = vld [vmem:[#allocation11 + $0x1] ss:$0 sm:$0xff]  ;;  %s755_s5 = smov 96   ;;  %v153_v56 = vld [vmem:[#allocation12 + $0x10] sm:$0xff] }
  0x28   :  { %190 = vst [vmem:[#allocation1 + $0x5] ss:$9 sm:$0xff] %v164_v10  ;;  %v154_v55 = vld [vmem:[#allocation12 + $0x18] sm:$0xff]  ;;  %v152_v58 = vld [vmem:[#allocation12 + $0x8] sm:$0xff]  ;;  %v151_v60 = vld [vmem:[#allocation12] sm:$0xff]  ;;  %s756_s15 = smov [#allocation16]  }
  0x29   :  { %192 = vst [vmem:[#allocation1 + $0x6] ss:$9 sm:$0xff] %v165_v11  ;;  %378 = vmatpush.msra.mxu2 %v154_v55  ;;  %s427_s4 = sshll.u32 %s756_s15, 4  ;;  %s429_s7 = sshll.u32 %s896_s10, 4  ;;  %v485_v11 = vld [vmem:[#allocation14] ss:$0 sm:$0xff]  ;;  %s428_s4 = int_to_ptr.vmem [resolvable:$true] %s427_s4  ;;  %s430_s7 = int_to_ptr.hbm [resolvable:$true] %s429_s7 }
  0x2a   :  { %194 = vst [vmem:[#allocation1 + $0x7] ss:$9 sm:$0xff] %v166_v12  ;;  %s757_s20 = smov [#allocation18]   ;;  %s440_s0 = sshll.u32 %s897_s11, 4  ;;  %s441_s0 = int_to_ptr.hbm [resolvable:$true] %s440_s0 }
  0x2b   :  { %144 = vst.msk [vmem:[#allocation16] sm:$0xff] %vm143_vm0, %v142_v13  ;;  %379 = vmatpush.msra.mxu2 %v153_v56  ;;  %s438_s21 = sshll.u32 %s757_s20, 4  ;;  %s758_s10 = smov [#allocation15]   ;;  %s439_s21 = int_to_ptr.vmem [resolvable:$true] %s438_s21 }
  0x2c   :  { %146 = vst.msk [vmem:[#allocation18] sm:$0xff] %vm143_vm0, %v145_v14  ;;  %s413_s24 = sshll.u32 %s758_s10, 4  ;;  %s415_s11 = sshll.u32 %s895_s9, 4  ;;  %s414_s24 = int_to_ptr.vmem [resolvable:$true] %s413_s24  ;;  %s416_s11 = int_to_ptr.hbm [resolvable:$true] %s415_s11 }
  0x2d   :  { %380 = vmatpush.msra.mxu2 %v152_v58 }
  0x2f   :  { %381 = vmatpush.msra.mxu2 %v151_v60 }
  0x31   :  { %v195_v15 = vld [vmem:[#allocation1] sm:$0xff] }
  0x32   :  { %462 = vmatmul.msk.f32.vlgmr.msra.gmra.mxu0 %vm196_vm1, %v195_v15  ;;  %v219_v16 = vld [vmem:[#allocation16] sm:$0xff] }
  0x33   :  { %463 = vmatmul.msk.f32.vlgmr.msra.gmra.mxu1 %vm143_vm0, %v219_v16  ;;  %v220_v27 = vld [vmem:[#allocation18] sm:$0xff] }
  0xaf   :  { %v216_v18 = vpop.f32.mrf.mxu0 }
  0xb0   :  { %v217_v19 = vadd.f32 %v482_v17, %v216_v18  ;;  %v242_v20 = vpop.f32.mrf.mxu1 }
  0xb2   :  { %v245_v21 = vadd.f32 %v242_v20, %v217_v19 }
  0xb4   :  { %486 = vtanh.f32 %v245_v21 }
  0xba   :  { %v487_v24 = vpop.eup %486 }
  0xbb   :  { %v247_v25 = vmul.f32 %v487_v24, %v483_v22 }
  0xbd   :  { %v248_v26 = vadd.f32 %v484_v23, %v247_v25 }
  0xbf   :  { %255 = vrot.lane.b32.xlu0 %v248_v26, %s753_s13 }
  0xc7   :  { %250 = vrot.lane.b32.xlu0 %v220_v27, %s754_s14 }
 0x131   :  { %v256_v28 = vpop.permute.xlu0 %255 }
 0x132   :  { %v258_v29 = vmul.f32 %v256_v28, %v248_v26 }
 0x134   :  { %260 = vrot.lane.b32.xlu1 %v258_v29, %s754_s14 }
 0x139   :  { %v251_v30 = vpop.permute.xlu0 %250 }
 0x13a   :  { %v253_v31 = vmul.f32 %v251_v30, %v248_v26 }
 0x1a6   :  { %v261_v32 = vpop.permute.xlu1 %260 }
 0x1a7   :  { %v263_v33 = vadd.f32 %v261_v32, %v253_v31 }
 0x1a9   :  { %488 = vtanh.f32 %v263_v33 }
 0x1af   :  { %v489_v34 = vpop.eup %488 }
 0x1b0   :  { %266 = vrot.lane.b32.xlu1 %v489_v34, %s753_s13 }
 0x222   :  { %v267_v35 = vpop.permute.xlu1 %266 }
 0x223   :  { %v269_v36 = vmul.f32 %v267_v35, %v248_v26 }
 0x225   :  { %v278_v37 = vperm.slane %v269_v36, 0  ;;  %v273_v38 = vrot.slane %v269_v36, 3  ;;  %v272_v39 = vrot.slane %v269_v36, 2  ;;  %v271_v42 = vrot.slane %v269_v36, 1 }
 0x226   :  { %v276_v43 = vrot.slane %v269_v36, 6  ;;  %v275_v44 = vrot.slane %v269_v36, 5  ;;  %v274_v48 = vrot.slane %v269_v36, 4  ;;  %v277_v50 = vrot.slane %v269_v36, 7 }
 0x227   :  { %286 = vrot.lane.b32.xlu2 %v278_v37, %s754_s14  ;;  %v281_v40 = vperm.slane %v273_v38, 0  ;;  %v280_v41 = vperm.slane %v272_v39, 0  ;;  %v279_v45 = vperm.slane %v271_v42, 0 }
 0x228   :  { %v284_v46 = vperm.slane %v276_v43, 0  ;;  %v283_v47 = vperm.slane %v275_v44, 0  ;;  %v282_v49 = vperm.slane %v274_v48, 0  ;;  %v285_v51 = vperm.slane %v277_v50, 0 }
 0x229   :  { %292 = vrot.lane.b32.xlu1 %v281_v40, %s754_s14  ;;  %290 = vrot.lane.b32.xlu0 %v280_v41, %s754_s14 }
 0x22f   :  { %288 = vrot.lane.b32.xlu2 %v279_v45, %s754_s14 }
 0x231   :  { %298 = vrot.lane.b32.xlu1 %v284_v46, %s754_s14  ;;  %296 = vrot.lane.b32.xlu0 %v283_v47, %s754_s14 }
 0x237   :  { %294 = vrot.lane.b32.xlu2 %v282_v49, %s754_s14 }
 0x239   :  { %324 = vrot.lane.b32.xlu1 %v263_v33, %s755_s5  ;;  %319 = vrot.lane.b32.xlu0 %v269_v36, %s754_s14 }
 0x23f   :  { %300 = vrot.lane.b32.xlu2 %v285_v51, %s754_s14 }
 0x281   :  { %v287_v52 = vpop.permute.xlu2 %286 }
 0x282   :  { %311 = vst.msk [vmem:[#allocation2] sm:$0x1] %vm310_vm2, %v287_v52 }
 0x289   :  { %v328_v53 = vld [vmem:[#allocation2] sm:$0x1]  ;;  %v289_v54 = vpop.permute.xlu2 %288 }
 0x28a   :  { %348 = vst [vmem:[#allocation1] ss:$9 sm:$0xff] %v328_v53 }
 0x28b   :  { %312 = vst.msk [vmem:[#allocation2 + $0x1] sm:$0x1] %vm310_vm2, %v289_v54 }
 0x291   :  { %v295_v57 = vpop.permute.xlu2 %294 }
 0x292   :  { %v329_v59 = vld [vmem:[#allocation2 + $0x1] sm:$0x1]  ;;  %315 = vst.msk [vmem:[#allocation2 + $0x4] sm:$0x1] %vm310_vm2, %v295_v57 }
 0x293   :  { %350 = vst [vmem:[#allocation1 + $0x1] ss:$9 sm:$0xff] %v329_v59 }
 0x299   :  { %v332_v61 = vld [vmem:[#allocation2 + $0x4] sm:$0x1]  ;;  %v301_v62 = vpop.permute.xlu2 %300 }
 0x29a   :  { %356 = vst [vmem:[#allocation1 + $0x4] ss:$9 sm:$0xff] %v332_v61 }
 0x29b   :  { %318 = vst.msk [vmem:[#allocation2 + $0x7] sm:$0x1] %vm310_vm2, %v301_v62  ;;  %v293_v63 = vpop.permute.xlu1 %292  ;;  %v291_v0 = vpop.permute.xlu0 %290 }
 0x29c   :  { %314 = vst.msk [vmem:[#allocation2 + $0x3] sm:$0x1] %vm310_vm2, %v293_v63 }
 0x29d   :  { %313 = vst.msk [vmem:[#allocation2 + $0x2] sm:$0x1] %vm310_vm2, %v291_v0 }
 0x2a2   :  { %v335_v1 = vld [vmem:[#allocation2 + $0x7] sm:$0x1] }
 0x2a3   :  { %362 = vst [vmem:[#allocation1 + $0x7] ss:$9 sm:$0xff] %v335_v1  ;;  %v331_v2 = vld [vmem:[#allocation2 + $0x3] sm:$0x1]  ;;  %v299_v3 = vpop.permute.xlu1 %298  ;;  %v297_v4 = vpop.permute.xlu0 %296 }
 0x2a4   :  { %354 = vst [vmem:[#allocation1 + $0x3] ss:$9 sm:$0xff] %v331_v2  ;;  %v330_v5 = vld [vmem:[#allocation2 + $0x2] sm:$0x1] }
 0x2a5   :  { %352 = vst [vmem:[#allocation1 + $0x2] ss:$9 sm:$0xff] %v330_v5 }
 0x2a6   :  { %317 = vst.msk [vmem:[#allocation2 + $0x6] sm:$0x1] %vm310_vm2, %v299_v3 }
 0x2a7   :  { %316 = vst.msk [vmem:[#allocation2 + $0x5] sm:$0x1] %vm310_vm2, %v297_v4 }
 0x2ab   :  { %v325_v6 = vpop.permute.xlu1 %324  ;;  %v320_v7 = vpop.permute.xlu0 %319 }
 0x2ac   :  { %327 = vst.msk [vmem:[#allocation18] sm:$0xff] %vm143_vm0, %v325_v6 }
 0x2ad   :  { %v334_v8 = vld [vmem:[#allocation2 + $0x6] sm:$0x1]  ;;  %322 = vst.msk [vmem:[#allocation16] sm:$0xff] %vm143_vm0, %v320_v7 }
 0x2ae   :  { %360 = vst [vmem:[#allocation1 + $0x6] ss:$9 sm:$0xff] %v334_v8  ;;  %v333_v9 = vld [vmem:[#allocation2 + $0x5] sm:$0x1]  ;;  %432 = dma.vmem_to_hbm [thread:$0]  %s428_s4, 128, %s430_s7, [#allocation17]  }
 0x2af   :  { %358 = vst [vmem:[#allocation1 + $0x5] ss:$9 sm:$0xff] %v333_v9  ;;  %443 = dma.vmem_to_hbm [thread:$0]  %s439_s21, 128, %s441_s0, [#allocation17]  }
 0x2b6   :  { %v363_v10 = vld [vmem:[#allocation1] sm:$0xff] }
 0x2b7   :  { %464 = vmatmul.msk.f32.vlgmr.msra.gmra.mxu2 %vm143_vm0, %v363_v10 }
 0x33a   :  { %v383_v12 = vpop.f32.mrf.mxu2 }
 0x33b   :  { %v384_v13 = vadd.f32 %v485_v11, %v383_v12 }
 0x33d   :  { %401 = vst [vmem:[#allocation15] sm:$0x1] %v384_v13  ;;  %v387_v14 = vrot.slane %v384_v13, 1  ;;  %v388_v15 = vrot.slane %v384_v13, 2  ;;  %v389_v16 = vrot.slane %v384_v13, 3  ;;  %v390_v17 = vrot.slane %v384_v13, 4 }
 0x33e   :  { %v391_v18 = vrot.slane %v384_v13, 5  ;;  %v392_v19 = vrot.slane %v384_v13, 6  ;;  %v393_v20 = vrot.slane %v384_v13, 7 }
 0x33f   :  { %402 = vst [vmem:[#allocation15 + $0x1] sm:$0x1] %v387_v14 }
 0x340   :  { %403 = vst [vmem:[#allocation15 + $0x2] sm:$0x1] %v388_v15 }
 0x341   :  { %404 = vst [vmem:[#allocation15 + $0x3] sm:$0x1] %v389_v16 }
 0x342   :  { %405 = vst [vmem:[#allocation15 + $0x4] sm:$0x1] %v390_v17 }
 0x343   :  { %406 = vst [vmem:[#allocation15 + $0x5] sm:$0x1] %v391_v18 }
 0x344   :  { %407 = vst [vmem:[#allocation15 + $0x6] sm:$0x1] %v392_v19 }
 0x345   :  { %408 = vst [vmem:[#allocation15 + $0x7] sm:$0x1] %v393_v20 }
 0x346   :  { %421 = dma.vmem_to_hbm [thread:$0]  %s414_s24, 128, %s416_s11, [#allocation5], %s748_s18, %s748_s18, %s749_s19  }
 0x347   :  { %738 = dma.done.wait [#allocation5], 128  }
 0x348   :  { %739 = vsyncadd [#allocation5], 4294967168 }
 0x349   :  { %740 = dma.done.wait [#allocation17], 256  }
 0x34a   :  { %741 = vsyncadd [#allocation17], 4294967040 }
 0x34b   :  { %456 = vsyncpa [#allocation4], 1 }
 0x34c   :  { %457 = vsyncpa [#allocation7], 1 }
 0x34d   :  { %458 = vsyncpa [#allocation10], 1 }
 0x34e   :  { %459 = vsyncpa [#allocation13], 1 }
 0x34f   :  { %460 = vsyncpa [#allocation5], 1 }
 0x350   :  { %461 = vsyncpa [#allocation17], 1 }

</bundles_post_ra>
